<compile_context>
chip_gen: v6e
topology: v6e:2x2x1
jax: 0.10.0
libtpu: 0.0.40
codegen_flags: <defaults>
</compile_context>

<pallas_src>
import functools

import jax
import jax.numpy as jnp
from jax import lax
from jax.experimental import pallas as pl
from jax.experimental.pallas import tpu as pltpu


def _round_up(x, m):
    return ((x + m - 1) // m) * m


def rnn_nlp_kernel(tok_ref, emb_wih_ref, whh_ref, b_ref, wc_ref, bc_ref,
                   out_ref, *, seq_len, batch_pad, vocab):
    rows = seq_len * batch_pad

    # --- Fused embedding gather + input projection (off the serial path) ----
    # one-hot(tokens) @ (emb @ W_ih) reproduces x_t @ W_ih exactly
    # (padding_idx=0 -> pre-projected table row 0 is all zeros).
    tok = tok_ref[...]                                         # (rows, 1) int32
    onehot = (tok == lax.broadcasted_iota(jnp.int32, (rows, vocab), 1)
              ).astype(jnp.bfloat16)                           # (rows, V)
    xi = (jnp.dot(onehot, emb_wih_ref[...],
                  preferred_element_type=jnp.float32)
          + b_ref[...])                                        # (rows, D) f32

    # --- Serial recurrence: per step only h @ W_hh + xi[t] -> tanh ----------
    w_hh = whh_ref[...]                                        # (D, D) bf16
    d = w_hh.shape[1]
    h = jnp.zeros((batch_pad, d), jnp.float32)
    # TODO(synk): for larger T, stage W_hh once in MXU weight registers
    # (pltpu.matmul_push_rhs / matmul_acc_lhs / matmul_pop) so the RHS is not
    # re-pushed every serial step, and switch to lax.fori_loop to bound vreg
    # live ranges; at T=8 the fully-unrolled jnp.dot recurrence is fine.
    for t in range(seq_len):
        xt = xi[t * batch_pad:(t + 1) * batch_pad]             # aligned (8, D) slab
        h = jnp.tanh(jnp.dot(h.astype(jnp.bfloat16), w_hh,
                             preferred_element_type=jnp.float32) + xt)

    # --- Classifier (128-lane padded) + exact, stable softmax ---------------
    logits = (jnp.dot(h.astype(jnp.bfloat16), wc_ref[...],
                      preferred_element_type=jnp.float32)
              + bc_ref[...])                                   # (B_pad, C_pad) f32
    m = jnp.max(logits, axis=1, keepdims=True)
    e = jnp.exp(logits - m)                                    # pad lanes -> exactly 0
    out_ref[...] = e / jnp.sum(e, axis=1, keepdims=True)       # exact divide


def prepare_params(params):
    """One-time (hoisted) preprocessing of PyTorch-style parameters."""
    emb, w_ih, w_hh, b_ih, b_hh, w_cls, b_cls = params
    V, D = emb.shape
    C = w_cls.shape[1]
    C_pad = _round_up(C, 128)                 # lane-dense classifier output

    # Pre-project the embedding table through W_ih (both fixed params), so the
    # in-kernel gather+projection is a single one-hot matmul.
    emb_wih = (emb.astype(jnp.float32) @ w_ih.astype(jnp.float32)
               ).astype(jnp.bfloat16)                          # (V, D)
    w_hh_b = w_hh.astype(jnp.bfloat16)                         # (D, D)
    b = (b_ih + b_hh).astype(jnp.float32)                      # (1, D)

    wc_p = jnp.zeros((D, C_pad), jnp.bfloat16).at[:, :C].set(
        w_cls.astype(jnp.bfloat16))
    bc_p = jnp.full((1, C_pad), -1e30, jnp.float32).at[:, :C].set(
        b_cls.astype(jnp.float32))
    return dict(emb_wih=emb_wih, w_hh=w_hh_b, b=b, wc=wc_p, bc=bc_p,
                vocab=V, dim=D, n_cls=C)


def torch_model_forward(tokens, prep):
    """tokens: (B, T) int32. Returns softmax probabilities (B, T+1)."""
    B, T = tokens.shape
    B_pad = _round_up(max(B, 8), 8)           # full f32 sublane group per step
    C_pad = prep["bc"].shape[1]

    # Only token plumbing stays in the wrapper (64 B of int32): pad the batch
    # with token 0 (padding_idx -> zero embedding row) and lay out time-major
    # so step t owns the aligned row slab [t*B_pad, (t+1)*B_pad).
    tok_col = (jnp.zeros((T, B_pad), jnp.int32).at[:, :B].set(tokens.T)
               .reshape(T * B_pad, 1))

    vmem = pl.BlockSpec(memory_space=pltpu.MemorySpace.VMEM)
    # TODO(synk): for non-trivial batch sizes add a grid over B with
    # dimension_semantics=("parallel",) so v7x's two TensorCores split the
    # batch, and tile the (T*B_pad, D) xi slab over T before it approaches the
    # v7x 64 MiB VMEM budget; at B=2, T=8 a grid only adds per-step overhead.
    probs_pad = pl.pallas_call(
        functools.partial(rnn_nlp_kernel, seq_len=T, batch_pad=B_pad,
                          vocab=prep["vocab"]),
        out_shape=jax.ShapeDtypeStruct((B_pad, C_pad), jnp.float32),
        in_specs=[vmem] * 6,
        out_specs=vmem,
    )(tok_col, prep["emb_wih"], prep["w_hh"], prep["b"], prep["wc"], prep["bc"])
    return probs_pad[:B, :prep["n_cls"]]


def init_params(key, vocab_size, vector_dim, sentence_length):
    D, V, C = vector_dim, vocab_size, sentence_length + 1
    ks = jax.random.split(key, 7)
    s = 1.0 / jnp.sqrt(jnp.float32(D))

    emb = jax.random.normal(ks[0], (V, D), jnp.float32)
    emb = emb.at[0].set(0.0)                                   # padding_idx=0

    # PyTorch stores W_ih/W_hh as (hidden, input); pre-transposed to (in, out).
    w_ih = jax.random.uniform(ks[1], (D, D), jnp.float32, -s, s)
    w_hh = jax.random.uniform(ks[2], (D, D), jnp.float32, -s, s)
    b_ih = jax.random.uniform(ks[3], (1, D), jnp.float32, -s, s)
    b_hh = jax.random.uniform(ks[4], (1, D), jnp.float32, -s, s)

    w_cls = jax.random.uniform(ks[5], (D, C), jnp.float32, -s, s)
    b_cls = jax.random.uniform(ks[6], (1, C), jnp.float32, -s, s)
    return emb, w_ih, w_hh, b_ih, b_hh, w_cls, b_cls


def reference_forward(tokens, params):
    """Full-f32 PyTorch-faithful reference (no bf16 rounding)."""
    emb, w_ih, w_hh, b_ih, b_hh, w_cls, b_cls = params
    x = jnp.take(emb, tokens, axis=0)                          # (B, T, D)
    B, T, D = x.shape
    h = jnp.zeros((B, D), jnp.float32)
    for t in range(T):
        h = jnp.tanh(x[:, t] @ w_ih + b_ih + h @ w_hh + b_hh)
    logits = h @ w_cls + b_cls
    return jax.nn.softmax(logits, axis=1)


if __name__ == "__main__":
    vector_dim = 32
    sentence_length = 8
    vocab_size = 10          # small synthetic vocab (e.g. chars)
    batch = 2

    key = jax.random.PRNGKey(0)
    pkey, xkey = jax.random.split(key)
    params = init_params(pkey, vocab_size, vector_dim, sentence_length)
    prep = prepare_params(params)        # hoisted once, not per forward call
    tokens = jax.random.randint(xkey, (batch, sentence_length), 0, vocab_size,
                                dtype=jnp.int32)

    probs = torch_model_forward(tokens, prep)
    probs = jax.block_until_ready(probs)

    ref = reference_forward(tokens, params)
    assert probs.shape == (batch, sentence_length + 1)
    # Kernel uses bf16 matmul operands (f32 accumulation), hence the
    # loose-but-safe tolerance against the pure-f32 reference.
    assert jnp.allclose(probs, ref, atol=2e-2, rtol=2e-2)
    # Exact divide in the softmax -> rows sum to 1 within f32 rounding.
    assert jnp.allclose(jnp.sum(probs, axis=1), 1.0, atol=1e-3)

    print("KERNEL_OK")
</pallas_src>

<mosaic_0001>
module attributes {stable_mosaic.version = 11 : i64} {
  func.func @rnn_nlp_kernel(%arg0: memref<64x1xi32, #tpu.memory_space<vmem>>, %arg1: memref<10x32xbf16, #tpu.memory_space<vmem>>, %arg2: memref<32x32xbf16, #tpu.memory_space<vmem>>, %arg3: memref<1x32xf32, #tpu.memory_space<vmem>>, %arg4: memref<32x128xbf16, #tpu.memory_space<vmem>>, %arg5: memref<1x128xf32, #tpu.memory_space<vmem>>, %arg6: memref<8x128xf32, #tpu.memory_space<vmem>>) attributes {dimension_semantics = [], scalar_prefetch = 0 : i64, scratch_operands = 0 : i64, tpu.core_type = #tpu.core_type<tc>} {
    %c0 = arith.constant 0 : index
    %c0_0 = arith.constant 0 : index
    %0 = vector.load %arg0[%c0, %c0_0] : memref<64x1xi32, #tpu.memory_space<vmem>>, vector<64x1xi32>
    %1 = tpu.iota {dimensions = array<i32: 1>} : vector<64x10xi32>
    %2 = vector.broadcast %0 : vector<64x1xi32> to vector<64x10xi32>
    %3 = arith.cmpi eq, %2, %1 : vector<64x10xi32>
    %4 = arith.extui %3 : vector<64x10xi1> to vector<64x10xi32>
    %5 = arith.sitofp %4 : vector<64x10xi32> to vector<64x10xf32>
    %6 = arith.truncf %5 : vector<64x10xf32> to vector<64x10xbf16>
    %c0_1 = arith.constant 0 : index
    %c0_2 = arith.constant 0 : index
    %7 = vector.load %arg1[%c0_1, %c0_2] : memref<10x32xbf16, #tpu.memory_space<vmem>>, vector<10x32xbf16>
    %cst = arith.constant dense<0.000000e+00> : vector<64x32xf32>
    %8 = tpu.matmul %6, %7, %cst {dimension_numbers = #tpu.dot_dimension_numbers<[1], [0], [0], [1], [0, 0, 1, 1], [], []>} : vector<64x10xbf16>, vector<10x32xbf16>, vector<64x32xf32> -> vector<64x32xf32>
    %c0_3 = arith.constant 0 : index
    %c0_4 = arith.constant 0 : index
    %9 = vector.load %arg3[%c0_3, %c0_4] : memref<1x32xf32, #tpu.memory_space<vmem>>, vector<1x32xf32>
    %10 = vector.broadcast %9 : vector<1x32xf32> to vector<64x32xf32>
    %11 = arith.addf %8, %10 : vector<64x32xf32>
    %c0_5 = arith.constant 0 : index
    %c0_6 = arith.constant 0 : index
    %12 = vector.load %arg2[%c0_5, %c0_6] : memref<32x32xbf16, #tpu.memory_space<vmem>>, vector<32x32xbf16>
    %cst_7 = arith.constant 0.000000e+00 : f32
    %13 = vector.broadcast %cst_7 : f32 to vector<8x32xf32>
    %14 = vector.extract_strided_slice %11 {offsets = [0, 0], sizes = [8, 32], strides = [1, 1]} : vector<64x32xf32> to vector<8x32xf32>
    %15 = arith.truncf %13 : vector<8x32xf32> to vector<8x32xbf16>
    %cst_8 = arith.constant dense<0.000000e+00> : vector<8x32xf32>
    %16 = tpu.matmul %15, %12, %cst_8 {dimension_numbers = #tpu.dot_dimension_numbers<[1], [0], [0], [1], [0, 0, 1, 1], [], []>} : vector<8x32xbf16>, vector<32x32xbf16>, vector<8x32xf32> -> vector<8x32xf32>
    %17 = arith.addf %16, %14 : vector<8x32xf32>
    %18 = math.tanh %17 : vector<8x32xf32>
    %19 = vector.extract_strided_slice %11 {offsets = [8, 0], sizes = [8, 32], strides = [1, 1]} : vector<64x32xf32> to vector<8x32xf32>
    %20 = arith.truncf %18 : vector<8x32xf32> to vector<8x32xbf16>
    %cst_9 = arith.constant dense<0.000000e+00> : vector<8x32xf32>
    %21 = tpu.matmul %20, %12, %cst_9 {dimension_numbers = #tpu.dot_dimension_numbers<[1], [0], [0], [1], [0, 0, 1, 1], [], []>} : vector<8x32xbf16>, vector<32x32xbf16>, vector<8x32xf32> -> vector<8x32xf32>
    %22 = arith.addf %21, %19 : vector<8x32xf32>
    %23 = math.tanh %22 : vector<8x32xf32>
    %24 = vector.extract_strided_slice %11 {offsets = [16, 0], sizes = [8, 32], strides = [1, 1]} : vector<64x32xf32> to vector<8x32xf32>
    %25 = arith.truncf %23 : vector<8x32xf32> to vector<8x32xbf16>
    %cst_10 = arith.constant dense<0.000000e+00> : vector<8x32xf32>
    %26 = tpu.matmul %25, %12, %cst_10 {dimension_numbers = #tpu.dot_dimension_numbers<[1], [0], [0], [1], [0, 0, 1, 1], [], []>} : vector<8x32xbf16>, vector<32x32xbf16>, vector<8x32xf32> -> vector<8x32xf32>
    %27 = arith.addf %26, %24 : vector<8x32xf32>
    %28 = math.tanh %27 : vector<8x32xf32>
    %29 = vector.extract_strided_slice %11 {offsets = [24, 0], sizes = [8, 32], strides = [1, 1]} : vector<64x32xf32> to vector<8x32xf32>
    %30 = arith.truncf %28 : vector<8x32xf32> to vector<8x32xbf16>
    %cst_11 = arith.constant dense<0.000000e+00> : vector<8x32xf32>
    %31 = tpu.matmul %30, %12, %cst_11 {dimension_numbers = #tpu.dot_dimension_numbers<[1], [0], [0], [1], [0, 0, 1, 1], [], []>} : vector<8x32xbf16>, vector<32x32xbf16>, vector<8x32xf32> -> vector<8x32xf32>
    %32 = arith.addf %31, %29 : vector<8x32xf32>
    %33 = math.tanh %32 : vector<8x32xf32>
    %34 = vector.extract_strided_slice %11 {offsets = [32, 0], sizes = [8, 32], strides = [1, 1]} : vector<64x32xf32> to vector<8x32xf32>
    %35 = arith.truncf %33 : vector<8x32xf32> to vector<8x32xbf16>
    %cst_12 = arith.constant dense<0.000000e+00> : vector<8x32xf32>
    %36 = tpu.matmul %35, %12, %cst_12 {dimension_numbers = #tpu.dot_dimension_numbers<[1], [0], [0], [1], [0, 0, 1, 1], [], []>} : vector<8x32xbf16>, vector<32x32xbf16>, vector<8x32xf32> -> vector<8x32xf32>
    %37 = arith.addf %36, %34 : vector<8x32xf32>
    %38 = math.tanh %37 : vector<8x32xf32>
    %39 = vector.extract_strided_slice %11 {offsets = [40, 0], sizes = [8, 32], strides = [1, 1]} : vector<64x32xf32> to vector<8x32xf32>
    %40 = arith.truncf %38 : vector<8x32xf32> to vector<8x32xbf16>
    %cst_13 = arith.constant dense<0.000000e+00> : vector<8x32xf32>
    %41 = tpu.matmul %40, %12, %cst_13 {dimension_numbers = #tpu.dot_dimension_numbers<[1], [0], [0], [1], [0, 0, 1, 1], [], []>} : vector<8x32xbf16>, vector<32x32xbf16>, vector<8x32xf32> -> vector<8x32xf32>
    %42 = arith.addf %41, %39 : vector<8x32xf32>
    %43 = math.tanh %42 : vector<8x32xf32>
    %44 = vector.extract_strided_slice %11 {offsets = [48, 0], sizes = [8, 32], strides = [1, 1]} : vector<64x32xf32> to vector<8x32xf32>
    %45 = arith.truncf %43 : vector<8x32xf32> to vector<8x32xbf16>
    %cst_14 = arith.constant dense<0.000000e+00> : vector<8x32xf32>
    %46 = tpu.matmul %45, %12, %cst_14 {dimension_numbers = #tpu.dot_dimension_numbers<[1], [0], [0], [1], [0, 0, 1, 1], [], []>} : vector<8x32xbf16>, vector<32x32xbf16>, vector<8x32xf32> -> vector<8x32xf32>
    %47 = arith.addf %46, %44 : vector<8x32xf32>
    %48 = math.tanh %47 : vector<8x32xf32>
    %49 = vector.extract_strided_slice %11 {offsets = [56, 0], sizes = [8, 32], strides = [1, 1]} : vector<64x32xf32> to vector<8x32xf32>
    %50 = arith.truncf %48 : vector<8x32xf32> to vector<8x32xbf16>
    %cst_15 = arith.constant dense<0.000000e+00> : vector<8x32xf32>
    %51 = tpu.matmul %50, %12, %cst_15 {dimension_numbers = #tpu.dot_dimension_numbers<[1], [0], [0], [1], [0, 0, 1, 1], [], []>} : vector<8x32xbf16>, vector<32x32xbf16>, vector<8x32xf32> -> vector<8x32xf32>
    %52 = arith.addf %51, %49 : vector<8x32xf32>
    %53 = math.tanh %52 : vector<8x32xf32>
    %54 = arith.truncf %53 : vector<8x32xf32> to vector<8x32xbf16>
    %c0_16 = arith.constant 0 : index
    %c0_17 = arith.constant 0 : index
    %55 = vector.load %arg4[%c0_16, %c0_17] : memref<32x128xbf16, #tpu.memory_space<vmem>>, vector<32x128xbf16>
    %cst_18 = arith.constant dense<0.000000e+00> : vector<8x128xf32>
    %56 = tpu.matmul %54, %55, %cst_18 {dimension_numbers = #tpu.dot_dimension_numbers<[1], [0], [0], [1], [0, 0, 1, 1], [], []>} : vector<8x32xbf16>, vector<32x128xbf16>, vector<8x128xf32> -> vector<8x128xf32>
    %c0_19 = arith.constant 0 : index
    %c0_20 = arith.constant 0 : index
    %57 = vector.load %arg5[%c0_19, %c0_20] : memref<1x128xf32, #tpu.memory_space<vmem>>, vector<1x128xf32>
    %58 = vector.broadcast %57 : vector<1x128xf32> to vector<8x128xf32>
    %59 = arith.addf %56, %58 : vector<8x128xf32>
    %cst_21 = arith.constant dense<0xFF800000> : vector<8xf32>
    %60 = vector.multi_reduction <maximumf>, %59, %cst_21 [1] : vector<8x128xf32> to vector<8xf32>
    %61 = vector.shape_cast %60 : vector<8xf32> to vector<8x1xf32>
    %62 = vector.broadcast %61 : vector<8x1xf32> to vector<8x128xf32>
    %63 = arith.subf %59, %62 : vector<8x128xf32>
    %64 = math.exp %63 : vector<8x128xf32>
    %cst_22 = arith.constant dense<0.000000e+00> : vector<8xf32>
    %65 = vector.multi_reduction <add>, %64, %cst_22 [1] : vector<8x128xf32> to vector<8xf32>
    %66 = vector.shape_cast %65 : vector<8xf32> to vector<8x1xf32>
    %67 = vector.broadcast %66 : vector<8x1xf32> to vector<8x128xf32>
    %68 = arith.divf %64, %67 : vector<8x128xf32>
    %c0_23 = arith.constant 0 : index
    %c0_24 = arith.constant 0 : index
    %69 = vector.load %arg6[%c0_23, %c0_24] : memref<8x128xf32, #tpu.memory_space<vmem>>, vector<8x128xf32>
    tpu.vector_store %arg6[%c0_23, %c0_24], %68 {strides = array<i32>} : memref<8x128xf32, #tpu.memory_space<vmem>>, vector<8x128xf32>,
    return
  }
}

</mosaic_0001>

<bundles_post_ra>
// kernel: tpu_custom_call.1
= control target key start
LH: loop header
LB: loop body
LE: loop exit
PB: predicated region body
PF: predicated region fallthrough
CT: control target
= control target key end

     0   :  { %v845_v2 = vmov 0   ;;  %v846_v5 = vmov 0.0   ;;  %vm114_vm0 = vcmask 1044480   ;;  %vm847_vm1 = vmmov 0   ;;  %s1024_s0 = inlined_call_operand.vmem [shape: s32[64,1], index: 0, kind: input, shape index: {}]   ;;  %s1025_s1 = inlined_call_operand.vmem [shape: bf16[10,32], index: 1, kind: input, shape index: {}]   ;;  %s1026_s2 = inlined_call_operand.vmem [shape: bf16[32,32], index: 2, kind: input, shape index: {}]   ;;  %s1027_s3 = inlined_call_operand.vmem [shape: f32[1,32], index: 3, kind: input, shape index: {}]   ;;  %s1028_s4 = inlined_call_operand.vmem [shape: bf16[32,128], index: 4, kind: input, shape index: {}]   ;;  %s1029_s5 = inlined_call_operand.vmem [shape: f32[1,128], index: 5, kind: input, shape index: {}]   ;;  %s1030_s6 = inlined_call_operand.hbm [shape: f32[8,128], index: 6, kind: output, shape index: {}]  }
   0x1   :  { %v27_v0 = vld [vmem:[%s1024_s0 + $0x10] sm:$0xff]  ;;  %v25_v1 = vld [vmem:[%s1024_s0] sm:$0xff]  ;;  %797 = vset.pattern.permute.xlu1 %v845_v2  ;;  %796 = vset.pattern.permute.xlu0 %v845_v2  ;;  %v28_v3 = vld [vmem:[%s1024_s0 + $0x18] sm:$0xff] }
   0x2   :  { %42 = vperm.xlu1 %797, %v27_v0   ;;  %36 = vperm.xlu0 %796, %v25_v1   ;;  %v26_v4 = vld [vmem:[%s1024_s0 + $0x8] sm:$0xff]  ;;  %v911_v8 = vld [vmem:[%s1026_s2] sm:$0xff]  }
   0x3   :  { %719 = vmatprep.subr.bf16.mxu1 %v846_v5  ;;  %v900_v6 = vld [vmem:[%s1026_s2 + $0x8] sm:$0xff]   ;;  %723 = vmatprep.mubr.msk.bf16.mxu1 %vm847_vm1, %v846_v5  ;;  %v800_v9 = vld [vmem:[%s1025_s1] sm:$0x1f]  }
   0x4   :  { %v30_v7 = vld [vmem:[%s1024_s0 + $0x28] sm:$0xff]  ;;  %720 = vmatpush3.bf16.msra.mxu1 %v900_v6  ;;  %v29_v10 = vld [vmem:[%s1024_s0 + $0x20] sm:$0xff]  ;;  %791 = vmatprep.subr.msk.bf16.mxu0 %vm114_vm0, %v800_v9  ;;  %v116_v11 = vsel %vm114_vm0, %v800_v9, 0 }
   0x5   :  { %721 = vmatprep.subr.bf16.mxu1 %v846_v5 }
   0x6   :  { %45 = vperm.xlu1 %797, %v28_v3   ;;  %39 = vperm.xlu0 %796, %v26_v4  }
   0x7   :  { %11 = vsyncpa [#allocation3], 0  ;;  %710 = vmatpush3.bf16.msra.mxu0 %v116_v11  ;;  %v32_v12 = vld [vmem:[%s1024_s0 + $0x38] sm:$0xff]  ;;  %v31_v13 = vld [vmem:[%s1024_s0 + $0x30] sm:$0xff]  ;;  %v33_v14 = vlaneseq  ;;  %vm101_vm6 = vcmask 80896   ;;  %vm199_vm11 = vcmask 261120  }
   0x8   :  { %722 = vmatpush3.bf16.msra.mxu1 %v911_v8  ;;  %735 = vmatprep.subr.bf16.mxu0 %v846_v5  ;;  %v956_v40 = vld [vmem:[%s1027_s3] ss:$0 sm:$0xff] }
   0x9   :  { %727 = vmatprep.subr.bf16.mxu1 %v846_v5  ;;  %v34_v15 = vand.u32 127, %v33_v14 }
   0xa   :  { %51 = vperm.xlu1 %797, %v30_v7   ;;  %48 = vperm.xlu0 %796, %v29_v10  }
   0xb   :  { %724 = vmatmul.mubr.bf16.vlgmr.msra.gmra.mxu1 %v845_v2 }
   0xc   :  { %728 = vmatpush3.bf16.msra.mxu1 %v900_v6  ;;  %731 = vmatprep.mubr.msk.bf16.mxu1 %vm847_vm1, %v846_v5 }
   0xd   :  { %729 = vmatprep.subr.bf16.mxu1 %v846_v5 }
   0xe   :  { %57 = vperm.xlu1 %797, %v32_v12   ;;  %54 = vperm.xlu0 %796, %v31_v13  }
  0x10   :  { %730 = vmatpush3.bf16.msra.mxu1 %v911_v8 }
  0x11   :  { %743 = vmatprep.subr.bf16.mxu1 %v846_v5 }
  0x7d   :  { %v43_v16 = vpop.permute.xlu1 %42  ;;  %v37_v17 = vpop.permute.xlu0 %36 }
  0x7e   :  { %vm61_vm2 = vcmp.eq.s32.totalorder %v43_v16, %v34_v15  ;;  %vm59_vm3 = vcmp.eq.s32.totalorder %v37_v17, %v34_v15 }
  0x7f   :  { %v652_v20 = vsel %vm61_vm2, 1.0, %v846_v5  ;;  %v650_v21 = vsel %vm59_vm3, 1.0, %v846_v5 }
  0x81   :  { %v46_v18 = vpop.permute.xlu1 %45  ;;  %v40_v19 = vpop.permute.xlu0 %39 }
  0x82   :  { %vm62_vm4 = vcmp.eq.s32.totalorder %v46_v18, %v34_v15  ;;  %vm60_vm5 = vcmp.eq.s32.totalorder %v40_v19, %v34_v15 }
  0x83   :  { %v653_v22 = vsel %vm62_vm4, 1.0, %v846_v5  ;;  %v651_v23 = vsel %vm60_vm5, 1.0, %v846_v5 }
  0x84   :  { %v84_v24 = vpack.c.bf16 %v653_v22, %v652_v20  ;;  %v83_v25 = vpack.c.bf16 %v651_v23, %v650_v21 }
  0x85   :  { %v52_v26 = vpop.permute.xlu1 %51  ;;  %v49_v27 = vpop.permute.xlu0 %48 }
  0x86   :  { %vm64_vm7 = vcmp.eq.s32.totalorder %v52_v26, %v34_v15  ;;  %vm63_vm8 = vcmp.eq.s32.totalorder %v49_v27, %v34_v15  ;;  %711 = vmatprep.mubr.msk.bf16.mxu0 %vm101_vm6, %v83_v25 }
  0x87   :  { %v655_v28 = vsel %vm64_vm7, 1.0, %v846_v5  ;;  %v654_v29 = vsel %vm63_vm8, 1.0, %v846_v5  ;;  %712 = vmatmul.mubr.msk.bf16.vlgmr.msra.gmra.mxu0 %vm101_vm6, %v84_v24 }
  0x88   :  { %v85_v30 = vpack.c.bf16 %v655_v28, %v654_v29  ;;  %736 = vmatpush3.bf16.msra.mxu0 %v900_v6 }
  0x89   :  { %v58_v31 = vpop.permute.xlu1 %57  ;;  %v55_v32 = vpop.permute.xlu0 %54  ;;  %737 = vmatprep.subr.bf16.mxu0 %v846_v5 }
  0x8a   :  { %vm66_vm9 = vcmp.eq.s32.totalorder %v58_v31, %v34_v15  ;;  %vm65_vm10 = vcmp.eq.s32.totalorder %v55_v32, %v34_v15  ;;  %715 = vmatprep.mubr.msk.bf16.mxu0 %vm101_vm6, %v85_v30 }
  0x8b   :  { %v657_v33 = vsel %vm66_vm9, 1.0, %v846_v5  ;;  %v656_v34 = vsel %vm65_vm10, 1.0, %v846_v5 }
  0x8c   :  { %v86_v35 = vpack.c.bf16 %v657_v33, %v656_v34  ;;  %738 = vmatpush3.bf16.msra.mxu0 %v911_v8 }
  0x8d   :  { %751 = vmatprep.subr.bf16.mxu0 %v846_v5 }
  0x8f   :  { %716 = vmatmul.mubr.msk.bf16.gmra.mxu0 %vm101_vm6, %v86_v35 }
  0x90   :  { %739 = vmatprep.mubr.msk.bf16.mxu0 %vm847_vm1, %v846_v5 }
  0xcb   :  { %v237_v36 = vpop.f32.mrf.mxu1 }
  0xcd   :  { %v725_v37 = vpop.f32.mrf.mxu1 }
  0xcf   :  { %v240_v38 = vpop.f32.mrf.mxu1 }
  0xd1   :  { %v726_v39 = vpop.f32.mrf.mxu1 }
  0xd2   :  { %v801_v39 = vld [vmem:[%s1028_s4 + $0x8] sm:$0xff]  }
 0x147   :  { %v713_v41 = vpop.f32.mrf.mxu0 }
 0x148   :  { %v161_v42 = vadd.f32 %v713_v41, %v956_v40 }
 0x149   :  { %v152_v43 = vpop.f32.mrf.mxu0 }
 0x14a   :  { %v153_v44 = vadd.f32 %v956_v40, %v152_v43 }
 0x14b   :  { %v714_v45 = vpop.f32.mrf.mxu0 }
 0x14c   :  { %v238_v46 = vadd.f32 %v237_v36, %v153_v44  ;;  %v164_v47 = vadd.f32 %v714_v45, %v956_v40 }
 0x14d   :  { %v155_v48 = vpop.f32.mrf.mxu0 }
 0x14e   :  { %803 = vtanh.f32 %v238_v46  ;;  %v156_v57 = vadd.f32 %v956_v40, %v155_v48 }
 0x14f   :  { %v717_v49 = vpop.f32.mrf.mxu0 }
 0x150   :  { %v962_v50 = vadd.f32 %v717_v49, %v956_v40 }
 0x151   :  { %v168_v51 = vpop.f32.mrf.mxu0 }
 0x152   :  { %v169_v52 = vadd.f32 %v956_v40, %v168_v51 }
 0x153   :  { %v718_v53 = vpop.f32.mrf.mxu0 }
 0x154   :  { %v966_v54 = vadd.f32 %v718_v53, %v956_v40 }
 0x155   :  { %v171_v1 = vpop.f32.mrf.mxu0 }
 0x156   :  { %v172_v26 = vadd.f32 %v956_v40, %v171_v1  ;;  %v802_v40 = vld [vmem:[%s1028_s4] sm:$0xff]   ;;  %s848_s4 = smov [#allocation2]  }
 0x157   :  { %s642_s23 = sshll.u32 %s848_s4, 4  ;;  %s643_s23 = int_to_ptr.vmem [resolvable:$true] %s642_s23 }
 0x158   :  { %p828_p1 = scmp.lt.s32.totalorder %s643_s23, %s643_s23 }
 0x15b   :  { %v804_v55 = vpop.eup %803 }
 0x15c   :  { %v244_v56 = vpack.c.bf16 %v804_v55, %v804_v55 }
 0x15e   :  { %732 = vmatmul.mubr.msk.bf16.vlgmr.msra.gmra.mxu1 %vm199_vm11, %v244_v56 }
 0x15f   :  { %744 = vmatpush3.bf16.msra.mxu1 %v900_v6  ;;  %747 = vmatprep.mubr.msk.bf16.mxu1 %vm847_vm1, %v846_v5 }
 0x160   :  { %745 = vmatprep.subr.bf16.mxu1 %v846_v5 }
 0x163   :  { %746 = vmatpush3.bf16.msra.mxu1 %v911_v8 }
 0x164   :  { %759 = vmatprep.subr.bf16.mxu1 %v846_v5 }
 0x21e   :  { %v282_v58 = vpop.f32.mrf.mxu1 }
 0x21f   :  { %v283_v59 = vadd.f32 %v282_v58, %v156_v57 }
 0x220   :  { %v733_v60 = vpop.f32.mrf.mxu1 }
 0x221   :  { %805 = vtanh.f32 %v283_v59 }
 0x222   :  { %v285_v61 = vpop.f32.mrf.mxu1 }
 0x224   :  { %v734_v62 = vpop.f32.mrf.mxu1 }
 0x22e   :  { %v806_v63 = vpop.eup %805 }
 0x22f   :  { %v289_v0 = vpack.c.bf16 %v806_v63, %v806_v63 }
 0x231   :  { %740 = vmatmul.mubr.msk.bf16.vlgmr.msra.gmra.mxu0 %vm199_vm11, %v289_v0 }
 0x232   :  { %752 = vmatpush3.bf16.msra.mxu0 %v900_v6  ;;  %755 = vmatprep.mubr.msk.bf16.mxu0 %vm847_vm1, %v846_v5 }
 0x233   :  { %753 = vmatprep.subr.bf16.mxu0 %v846_v5 }
 0x236   :  { %754 = vmatpush3.bf16.msra.mxu0 %v911_v8 }
 0x237   :  { %767 = vmatprep.subr.bf16.mxu0 %v846_v5 }
 0x2f1   :  { %v327_v2 = vpop.f32.mrf.mxu0 }
 0x2f2   :  { %v328_v3 = vadd.f32 %v327_v2, %v161_v42 }
 0x2f3   :  { %v741_v4 = vpop.f32.mrf.mxu0 }
 0x2f4   :  { %807 = vtanh.f32 %v328_v3 }
 0x2f5   :  { %v330_v7 = vpop.f32.mrf.mxu0 }
 0x2f7   :  { %v742_v9 = vpop.f32.mrf.mxu0 }
 0x301   :  { %v808_v10 = vpop.eup %807 }
 0x302   :  { %v334_v11 = vpack.c.bf16 %v808_v10, %v808_v10 }
 0x304   :  { %748 = vmatmul.mubr.msk.bf16.vlgmr.msra.gmra.mxu1 %vm199_vm11, %v334_v11 }
 0x305   :  { %760 = vmatpush3.bf16.msra.mxu1 %v900_v6  ;;  %763 = vmatprep.mubr.msk.bf16.mxu1 %vm847_vm1, %v846_v5 }
 0x306   :  { %761 = vmatprep.subr.bf16.mxu1 %v846_v5 }
 0x309   :  { %762 = vmatpush3.bf16.msra.mxu1 %v911_v8 }
 0x30a   :  { %775 = vmatprep.subr.bf16.mxu1 %v846_v5 }
 0x3c4   :  { %v372_v12 = vpop.f32.mrf.mxu1 }
 0x3c5   :  { %v373_v13 = vadd.f32 %v372_v12, %v164_v47 }
 0x3c6   :  { %v749_v14 = vpop.f32.mrf.mxu1 }
 0x3c7   :  { %809 = vtanh.f32 %v373_v13 }
 0x3c8   :  { %v375_v15 = vpop.f32.mrf.mxu1 }
 0x3ca   :  { %v750_v16 = vpop.f32.mrf.mxu1 }
 0x3d4   :  { %v810_v17 = vpop.eup %809 }
 0x3d5   :  { %v379_v18 = vpack.c.bf16 %v810_v17, %v810_v17 }
 0x3d7   :  { %756 = vmatmul.mubr.msk.bf16.vlgmr.msra.gmra.mxu0 %vm199_vm11, %v379_v18 }
 0x3d8   :  { %768 = vmatpush3.bf16.msra.mxu0 %v900_v6  ;;  %771 = vmatprep.mubr.msk.bf16.mxu0 %vm847_vm1, %v846_v5 }
 0x3d9   :  { %769 = vmatprep.subr.bf16.mxu0 %v846_v5 }
 0x3dc   :  { %770 = vmatpush3.bf16.msra.mxu0 %v911_v8 }
 0x3dd   :  { %783 = vmatprep.subr.bf16.mxu0 %v846_v5 }
 0x497   :  { %v417_v19 = vpop.f32.mrf.mxu0 }
 0x498   :  { %v418_v20 = vadd.f32 %v417_v19, %v169_v52 }
 0x499   :  { %v757_v21 = vpop.f32.mrf.mxu0 }
 0x49a   :  { %811 = vtanh.f32 %v418_v20 }
 0x49b   :  { %v420_v22 = vpop.f32.mrf.mxu0 }
 0x49d   :  { %v758_v23 = vpop.f32.mrf.mxu0 }
 0x4a7   :  { %v812_v24 = vpop.eup %811 }
 0x4a8   :  { %v424_v25 = vpack.c.bf16 %v812_v24, %v812_v24 }
 0x4aa   :  { %764 = vmatmul.mubr.msk.bf16.vlgmr.msra.gmra.mxu1 %vm199_vm11, %v424_v25 }
 0x4ab   :  { %776 = vmatpush3.bf16.msra.mxu1 %v900_v6  ;;  %779 = vmatprep.mubr.msk.bf16.mxu1 %vm847_vm1, %v846_v5 }
 0x4ac   :  { %777 = vmatprep.subr.bf16.mxu1 %v846_v5 }
 0x4af   :  { %778 = vmatpush3.bf16.msra.mxu1 %v911_v8 }
 0x56a   :  { %v462_v27 = vpop.f32.mrf.mxu1 }
 0x56b   :  { %v463_v28 = vadd.f32 %v462_v27, %v172_v26 }
 0x56c   :  { %v765_v29 = vpop.f32.mrf.mxu1 }
 0x56d   :  { %813 = vtanh.f32 %v463_v28 }
 0x56e   :  { %v465_v30 = vpop.f32.mrf.mxu1 }
 0x570   :  { %v766_v31 = vpop.f32.mrf.mxu1 }
 0x57a   :  { %v814_v32 = vpop.eup %813 }
 0x57b   :  { %v469_v33 = vpack.c.bf16 %v814_v32, %v814_v32 }
 0x57d   :  { %772 = vmatmul.mubr.msk.bf16.vlgmr.msra.gmra.mxu0 %vm199_vm11, %v469_v33 }
 0x57e   :  { %787 = vmatprep.mubr.msk.bf16.mxu0 %vm847_vm1, %v846_v5  ;;  %784 = vmatpush3.bf16.msra.mxu0 %v801_v39 }
 0x57f   :  { %785 = vmatprep.subr.bf16.mxu0 %v846_v5  ;;  %v673_v5 = vld [vmem:[%s1029_s5] ss:$0 sm:$0xff]  ;;  %s823_s5 = scalar_lea.vmem %s643_s23, 128 }
 0x580   :  { %p824_p0 = scmp.ne.s32.totalorder %s643_s23, %s823_s5  ;;  %p829_p2 = scmp.lt.s32.totalorder %s823_s5, %s823_s5 }
 0x582   :  { %786 = vmatpush3.bf16.msra.mxu0 %v802_v40  ;;  %p830_p3 = por %p829_p2, %p828_p1 }
 0x584   :  { %p831_p4 = pnand %p830_p3, %p824_p0 }
 0x63d   :  { %v507_v6 = vpop.f32.mrf.mxu0 }
 0x63e   :  { %v508_v34 = vadd.f32 %v507_v6, %v962_v50 }
 0x63f   :  { %v773_v35 = vpop.f32.mrf.mxu0 }
 0x640   :  { %815 = vtanh.f32 %v508_v34 }
 0x641   :  { %v510_v8 = vpop.f32.mrf.mxu0 }
 0x643   :  { %v774_v36 = vpop.f32.mrf.mxu0 }
 0x64d   :  { %v816_v37 = vpop.eup %815 }
 0x64e   :  { %v514_v38 = vpack.c.bf16 %v816_v37, %v816_v37 }
 0x650   :  { %780 = vmatmul.mubr.msk.bf16.vlgmr.msra.gmra.mxu1 %vm199_vm11, %v514_v38 }
 0x710   :  { %v552_v41 = vpop.f32.mrf.mxu1 }
 0x711   :  { %v553_v42 = vadd.f32 %v552_v41, %v966_v54 }
 0x712   :  { %v781_v43 = vpop.f32.mrf.mxu1 }
 0x713   :  { %817 = vtanh.f32 %v553_v42 }
 0x714   :  { %v555_v44 = vpop.f32.mrf.mxu1 }
 0x716   :  { %v782_v45 = vpop.f32.mrf.mxu1 }
 0x720   :  { %v818_v46 = vpop.eup %817 }
 0x721   :  { %v559_v47 = vpack.c.bf16 %v818_v46, %v818_v46 }
 0x723   :  { %788 = vmatmul.mubr.msk.bf16.vlgmr.msra.gmra.mxu0 %vm199_vm11, %v559_v47 }
 0x7e3   :  { %v620_v48 = vpop.f32.mrf.mxu0 }
 0x7e4   :  { %v621_v49 = vadd.f32 %v673_v5, %v620_v48 }
 0x7e5   :  { %v789_v50 = vpop.f32.mrf.mxu0 }
 0x7e6   :  { %626 = vmax.xlane.f32.xlu0 %v621_v49 }
 0x7e7   :  { %v623_v51 = vpop.f32.mrf.mxu0 }
 0x7e9   :  { %v790_v52 = vpop.f32.mrf.mxu0 }
 0x86f   :  { %v627_v53 = vpop.xlane.xlu0 %626 }
 0x870   :  { %v628_v54 = vsub.f32 %v621_v49, %v627_v53 }
 0x872   :  { %v629_v55 = vmul.f32 1.442695, %v628_v54 }
 0x874   :  { %819 = vpow2.f32 %v629_v55 }
 0x881   :  { %v820_v56 = vpop.eup %819 }
 0x882   :  { %631 = vadd.xlane.f32.xlu1 %v820_v56 }
 0x90b   :  { %v632_v57 = vpop.xlane.xlu1 %631 }
 0x90c   :  { %821 = vrcp.f32 %v632_v57 }
 0x919   :  { %v822_v58 = vpop.eup %821 }
 0x91a   :  { %v634_v59 = vmul.f32 %v822_v58, %v820_v56 }
 0x91c   :  { %635 = vst [vmem:[#allocation2] sm:$0xff] %v634_v59 }
 0x91d   :  { %834 = shalt.err (!%p831_p4)
}
 0x91e   :  { %645 = dma.vmem_to_hbm [thread:$0]  %s643_s23, 128, %s1030_s6, [#allocation3]  }
 0x91f   :  { %843 = dma.done.wait [#allocation3], 128  }
 0x920   :  { %844 = vsyncadd [#allocation3], 4294967168 }
 0x921   :  { %649 = vsyncpa [#allocation3], 1 }

</bundles_post_ra>
